<compile_context>
chip_gen: v5e
topology: v5e:2x2
jax: 0.10.0
libtpu: 0.0.40
codegen_flags: <defaults>
</compile_context>

<pallas_src>
import functools

import jax
import jax.numpy as jnp
from jax.experimental import pallas as pl
from jax.experimental.pallas import tpu as pltpu


def _attention_kernel(g_ref, x_ref, p_ref, out_ref, *, f_g, f_l, use_mxu):
    """Fused attention-gate kernel on a (C, TS) channel-row / spatial-lane tile.

    g_ref : (1, F_g, TS)            gating features tile (spatial on lanes)
    x_ref : (1, F_l, TS)            skip-connection features tile
    p_ref : (F_int, F_g+F_l+3)      packed params [wg | wx | b_relu | wp | bp]
    out_ref:(1, F_l, TS)            gated output tile  x * sigmoid(psi)
    """
    g = g_ref[0]                      # (F_g, TS)
    x = x_ref[0]                      # (F_l, TS)
    p = p_ref[...]                    # (F_int, F_g+F_l+3)

    wg = p[:, 0:f_g]                              # (F_int, F_g)
    wx = p[:, f_g:f_g + f_l]                      # (F_int, F_l)
    br = p[:, f_g + f_l:f_g + f_l + 1]            # (F_int, 1) fused b_g + b_x
    wp = p[:, f_g + f_l + 1:f_g + f_l + 2]        # (F_int, 1) psi weight column
    bp = p[0:1, f_g + f_l + 2:f_g + f_l + 3]      # (1, 1)     psi bias

    # a = relu(W_g @ g + W_x @ x + (b_g + b_x))
    if use_mxu:
        # Offload the channel contraction to the MXU (idle otherwise); frees
        # the VALU slot that binds on v7x / v6e.
        acc = (jnp.dot(wg, g, preferred_element_type=jnp.float32)
               + jnp.dot(wx, x, preferred_element_type=jnp.float32))
    else:
        # VPU fallback: F_g + F_l column-weighted vreg FMAs (outer-product
        # style (F_int,1)*(1,TS) terms).  Fine on memory-bound v5e.
        acc = wg[:, 0:1] * g[0:1, :]
        for c in range(1, f_g):
            acc = acc + wg[:, c:c + 1] * g[c:c + 1, :]
        for c in range(f_l):
            acc = acc + wx[:, c:c + 1] * x[c:c + 1, :]
    a = jnp.maximum(acc + br, 0.0)                # (F_int, TS)

    # psi logits: VPU multiply + sublane (XLU) reduction; avoids a width-1
    # MXU matmul.
    logits = jnp.sum(a * wp, axis=0, keepdims=True) + bp   # (1, TS)
    psi = jax.nn.sigmoid(logits)

    # Gated output, broadcast over the channel sublanes; lane-dense store.
    out_ref[0] = x * psi


def attention_block(g, x, params, *, tile_s=65536, use_mxu=True):
    """g, x: NCHW float32 arrays. Returns x * psi in NCHW (same as the module).

    params: packed (F_int, F_g + F_l + 3) slab from make_params().
    """
    N, F_g, H, W = g.shape
    _, F_l, _, _ = x.shape
    F_int = params.shape[0]
    S = H * W

    # Pure views: NCHW -> (N, C, H*W). No transposes, no extra HBM pass.
    g2 = g.reshape(N, F_g, S)
    x2 = x.reshape(N, F_l, S)

    # Spatial tile: as large as possible (amortize the ~0.35us per-step cost),
    # multiple of 128 (lane-dense), capped at 128K lanes so the pipelined
    # buffer budget (~192*ts bytes, sublane-padded) stays VMEM-safe on every
    # generation including v7x (64 MiB physical / 32 MiB scoped default).
    tile_cap = max(128, (min(int(tile_s), 131072) // 128) * 128)
    if S <= tile_cap:
        ts = S            # full-extent block: legal for any S, no ragged block
    else:
        ts = tile_cap     # ragged last block handled by Pallas masking
    n_s = pl.cdiv(S, ts)
    grid = (N, n_s)

    # g/x/out streams: 2 buffers each, 8 sublanes after VMEM padding, f32.
    est_vmem = 3 * 2 * 8 * ts * 4 + (2 << 20)
    cp_kwargs = dict(dimension_semantics=("parallel", "parallel"))
    if est_vmem > (14 << 20):
        # v5e's default scoped VMEM is only 16 MiB; raise it (still far below
        # v7x's 32 MiB scoped default thanks to the tile cap).
        cp_kwargs["vmem_limit_bytes"] = min(est_vmem, 30 << 20)

    kernel = functools.partial(_attention_kernel, f_g=F_g, f_l=F_l,
                               use_mxu=use_mxu)

    P = F_g + F_l + 3
    out = pl.pallas_call(
        kernel,
        out_shape=jax.ShapeDtypeStruct((N, F_l, S), jnp.float32),
        grid_spec=pltpu.PrefetchScalarGridSpec(
            num_scalar_prefetch=0,
            grid=grid,
            in_specs=[
                pl.BlockSpec((1, F_g, ts), lambda n, s: (n, 0, s)),   # g tile
                pl.BlockSpec((1, F_l, ts), lambda n, s: (n, 0, s)),   # x tile
                pl.BlockSpec((F_int, P), lambda n, s: (0, 0)),        # params
            ],
            out_specs=pl.BlockSpec((1, F_l, ts), lambda n, s: (n, 0, s)),
        ),
        compiler_params=pltpu.CompilerParams(**cp_kwargs),
    )(g2, x2, params)

    # TODO(synk): if the upstream producer can emit g and x already stacked as
    # one (N, F_g+F_l, S) array, take a single full-8-sublane input block here
    # (do NOT concatenate in this wrapper -- that would add an HBM pass).
    return out.reshape(N, F_l, H, W)


def _fold_conv_bn(w, b, gamma, beta, mean, var, eps=1e-5):
    """Fold eval-mode BatchNorm into a 1x1 conv stored as (C_out, C_in)."""
    scale = gamma / jnp.sqrt(var + eps)          # (C_out,)
    w_eff = w * scale[:, None]                   # (C_out, C_in)
    b_eff = (b - mean) * scale + beta            # (C_out,)
    return w_eff, b_eff


def make_params(key, F_g, F_l, F_int):
    """Deterministic synthetic parameters, packed into one (F_int, F_g+F_l+3)
    slab: [ wg | wx | (b_g+b_x) | wp_column | bp_replicated ]."""
    k1, k2, k3, k4, k5, k6 = jax.random.split(key, 6)
    # Conv2d 1x1 weights stored output-major (C_out, C_in), like PyTorch squeezed.
    wg = jax.random.normal(k1, (F_int, F_g), jnp.float32) * 0.1
    bg = jax.random.normal(k2, (F_int,), jnp.float32) * 0.1
    wx = jax.random.normal(k3, (F_int, F_l), jnp.float32) * 0.1
    bx = jax.random.normal(k4, (F_int,), jnp.float32) * 0.1
    wp = jax.random.normal(k5, (1, F_int), jnp.float32) * 0.1
    bp = jax.random.normal(k6, (1,), jnp.float32) * 0.1

    # BatchNorm defaults: gamma=1, beta=0, running_mean=0, running_var=1.
    # TODO(synk): real checkpoints must pass the actual running_mean/var here.
    def bn_default(c):
        return (jnp.ones((c,), jnp.float32), jnp.zeros((c,), jnp.float32),
                jnp.zeros((c,), jnp.float32), jnp.ones((c,), jnp.float32))

    wg_e, bg_e = _fold_conv_bn(wg, bg, *bn_default(F_int))
    wx_e, bx_e = _fold_conv_bn(wx, bx, *bn_default(F_int))
    wp_e, bp_e = _fold_conv_bn(wp, bp, *bn_default(1))

    slab = jnp.concatenate([
        wg_e,                                    # (F_int, F_g)
        wx_e,                                    # (F_int, F_l)
        (bg_e + bx_e)[:, None],                  # (F_int, 1) fused ReLU bias
        wp_e.T,                                  # (F_int, 1) psi weight column
        jnp.full((F_int, 1), bp_e[0], jnp.float32),   # (F_int, 1) psi bias
    ], axis=1)
    return slab


def _reference(g, x, params, F_g, F_l):
    """Pure-JAX reference (same math, no Pallas) for a correctness check."""
    wg = params[:, 0:F_g]
    wx = params[:, F_g:F_g + F_l]
    br = params[:, F_g + F_l]
    wp = params[:, F_g + F_l + 1]
    bp = params[0, F_g + F_l + 2]
    g1 = jnp.einsum('oi,nihw->nohw', wg, g)
    x1 = jnp.einsum('oi,nihw->nohw', wx, x)
    a = jnp.maximum(g1 + x1 + br[None, :, None, None], 0.0)
    logits = jnp.einsum('o,nohw->nhw', wp, a)[:, None] + bp
    psi = jax.nn.sigmoid(logits)                 # (N, 1, H, W)
    return x * psi


if __name__ == "__main__":
    # Small shapes consistent with the module: N=2, F_g=F_l=4, F_int=8, 16x16.
    N, F_g, F_l, F_int, H, W = 2, 4, 4, 8, 16, 16

    key = jax.random.PRNGKey(0)
    kg, kx, kp = jax.random.split(key, 3)
    g = jax.random.normal(kg, (N, F_g, H, W), jnp.float32)
    x = jax.random.normal(kx, (N, F_l, H, W), jnp.float32)
    params = make_params(kp, F_g, F_l, F_int)

    out = attention_block(g, x, params)
    out = jax.block_until_ready(out)

    ref = _reference(g, x, params, F_g, F_l)
    assert out.shape == (N, F_l, H, W)
    assert jnp.allclose(out, ref, atol=1e-5, rtol=1e-5), "mismatch vs reference"

    print("KERNEL_OK")
</pallas_src>

<mosaic_0001>
module attributes {stable_mosaic.version = 11 : i64} {
  func.func @_attention_kernel(%arg0: i32, %arg1: i32, %arg2: memref<1x4x256xf32, #tpu.memory_space<vmem>>, %arg3: memref<1x4x256xf32, #tpu.memory_space<vmem>>, %arg4: memref<8x11xf32, #tpu.memory_space<vmem>>, %arg5: memref<1x4x256xf32, #tpu.memory_space<vmem>>) attributes {dimension_semantics = [#tpu.dimension_semantics<parallel>, #tpu.dimension_semantics<parallel>], iteration_bounds = array<i64: 2, 1>, scalar_prefetch = 0 : i64, scratch_operands = 0 : i64, tpu.core_type = #tpu.core_type<tc>, window_params = [{transform_indices = @transform_0, window_bounds = array<i64: 1, 4, 256>}, {transform_indices = @transform_1, window_bounds = array<i64: 1, 4, 256>}, {pipeline_mode = #tpu.pipeline_mode<synchronous>, transform_indices = @transform_2, window_bounds = array<i64: 8, 11>}, {transform_indices = @transform_3, window_bounds = array<i64: 1, 4, 256>}]} {
    %c0 = arith.constant 0 : index
    %c0_0 = arith.constant 0 : index
    %c0_1 = arith.constant 0 : index
    %0 = vector.load %arg2[%c0, %c0_0, %c0_1] : memref<1x4x256xf32, #tpu.memory_space<vmem>>, vector<1x4x256xf32>
    %1 = vector.shape_cast %0 : vector<1x4x256xf32> to vector<4x256xf32>
    %c0_2 = arith.constant 0 : index
    %c0_3 = arith.constant 0 : index
    %c0_4 = arith.constant 0 : index
    %2 = vector.load %arg3[%c0_2, %c0_3, %c0_4] : memref<1x4x256xf32, #tpu.memory_space<vmem>>, vector<1x4x256xf32>
    %3 = vector.shape_cast %2 : vector<1x4x256xf32> to vector<4x256xf32>
    %c0_5 = arith.constant 0 : index
    %c0_6 = arith.constant 0 : index
    %4 = vector.load %arg4[%c0_5, %c0_6] : memref<8x11xf32, #tpu.memory_space<vmem>>, vector<8x11xf32>
    %5 = vector.extract_strided_slice %4 {offsets = [0, 0], sizes = [8, 4], strides = [1, 1]} : vector<8x11xf32> to vector<8x4xf32>
    %6 = vector.extract_strided_slice %4 {offsets = [0, 4], sizes = [8, 4], strides = [1, 1]} : vector<8x11xf32> to vector<8x4xf32>
    %7 = vector.extract_strided_slice %4 {offsets = [0, 8], sizes = [8, 1], strides = [1, 1]} : vector<8x11xf32> to vector<8x1xf32>
    %8 = vector.extract_strided_slice %4 {offsets = [0, 9], sizes = [8, 1], strides = [1, 1]} : vector<8x11xf32> to vector<8x1xf32>
    %9 = vector.extract_strided_slice %4 {offsets = [0, 10], sizes = [1, 1], strides = [1, 1]} : vector<8x11xf32> to vector<1x1xf32>
    %cst = arith.constant dense<0.000000e+00> : vector<8x256xf32>
    %10 = tpu.matmul %5, %1, %cst {dimension_numbers = #tpu.dot_dimension_numbers<[1], [0], [0], [1], [0, 0, 1, 1], [], []>} : vector<8x4xf32>, vector<4x256xf32>, vector<8x256xf32> -> vector<8x256xf32>
    %cst_7 = arith.constant dense<0.000000e+00> : vector<8x256xf32>
    %11 = tpu.matmul %6, %3, %cst_7 {dimension_numbers = #tpu.dot_dimension_numbers<[1], [0], [0], [1], [0, 0, 1, 1], [], []>} : vector<8x4xf32>, vector<4x256xf32>, vector<8x256xf32> -> vector<8x256xf32>
    %12 = arith.addf %10, %11 : vector<8x256xf32>
    %13 = vector.broadcast %7 : vector<8x1xf32> to vector<8x256xf32>
    %14 = arith.addf %12, %13 : vector<8x256xf32>
    %cst_8 = arith.constant 0.000000e+00 : f32
    %15 = vector.broadcast %cst_8 : f32 to vector<8x256xf32>
    %16 = arith.maximumf %14, %15 : vector<8x256xf32>
    %17 = vector.broadcast %8 : vector<8x1xf32> to vector<8x256xf32>
    %18 = arith.mulf %16, %17 : vector<8x256xf32>
    %cst_9 = arith.constant dense<0.000000e+00> : vector<256xf32>
    %19 = vector.multi_reduction <add>, %18, %cst_9 [0] : vector<8x256xf32> to vector<256xf32>
    %20 = vector.shape_cast %19 : vector<256xf32> to vector<1x256xf32>
    %21 = vector.broadcast %9 : vector<1x1xf32> to vector<1x256xf32>
    %22 = arith.addf %20, %21 : vector<1x256xf32>
    %23 = arith.negf %22 : vector<1x256xf32>
    %24 = math.exp %23 : vector<1x256xf32>
    %cst_10 = arith.constant 1.000000e+00 : f32
    %25 = vector.broadcast %cst_10 : f32 to vector<1x256xf32>
    %26 = arith.addf %25, %24 : vector<1x256xf32>
    %27 = arith.divf %25, %26 : vector<1x256xf32>
    %28 = vector.broadcast %27 : vector<1x256xf32> to vector<4x256xf32>
    %29 = arith.mulf %3, %28 : vector<4x256xf32>
    %c0_11 = arith.constant 0 : index
    %c0_12 = arith.constant 0 : index
    %c0_13 = arith.constant 0 : index
    %30 = vector.load %arg5[%c0_11, %c0_12, %c0_13] : memref<1x4x256xf32, #tpu.memory_space<vmem>>, vector<1x4x256xf32>
    %31 = vector.shape_cast %30 : vector<1x4x256xf32> to vector<4x256xf32>
    %32 = vector.shape_cast %29 : vector<4x256xf32> to vector<1x4x256xf32>
    tpu.vector_store %arg5[%c0_11, %c0_12, %c0_13], %32 {strides = array<i32>} : memref<1x4x256xf32, #tpu.memory_space<vmem>>, vector<1x4x256xf32>,
    return
  }
  func.func @transform_0(%arg0: i32, %arg1: i32) -> (i32, i32, i32) {
    %c0_i32 = arith.constant 0 : i32
    %c0_i32_0 = arith.constant 0 : i32
    return %arg0, %c0_i32, %arg1 : i32, i32, i32
  }
  func.func @transform_1(%arg0: i32, %arg1: i32) -> (i32, i32, i32) {
    %c0_i32 = arith.constant 0 : i32
    %c0_i32_0 = arith.constant 0 : i32
    return %arg0, %c0_i32, %arg1 : i32, i32, i32
  }
  func.func @transform_2(%arg0: i32, %arg1: i32) -> (i32, i32) {
    %c0_i32 = arith.constant 0 : i32
    %c0_i32_0 = arith.constant 0 : i32
    %c0_i32_1 = arith.constant 0 : i32
    return %c0_i32, %c0_i32_0 : i32, i32
  }
  func.func @transform_3(%arg0: i32, %arg1: i32) -> (i32, i32, i32) {
    %c0_i32 = arith.constant 0 : i32
    %c0_i32_0 = arith.constant 0 : i32
    return %arg0, %c0_i32, %arg1 : i32, i32, i32
  }
}

</mosaic_0001>

<bundles_post_ra>
// kernel: tpu_custom_call.1
= control target key start
LH: loop header
LB: loop body
LE: loop exit
PB: predicated region body
PF: predicated region fallthrough
CT: control target
= control target key end

     0   :  { %s1100_s0 = inlined_call_operand.hbm [shape: f32[2,4,256], index: 0, kind: input, shape index: {}]   ;;  %s1101_s1 = inlined_call_operand.hbm [shape: f32[2,4,256], index: 1, kind: input, shape index: {}]   ;;  %s1102_s2 = inlined_call_operand.hbm [shape: f32[8,11], index: 2, kind: input, shape index: {}]   ;;  %s1103_s3 = inlined_call_operand.hbm [shape: f32[2,4,256], index: 3, kind: output, shape index: {}]  }
   0x1   :  { %1106 = sst [smem:[#allocation16_spill]] %s1102_s2 }
   0x2   :  { %8 = vsyncpa [#allocation3], 0 }
   0x3   :  { %10 = vsyncpa [#allocation3 + $0x1], 0 }
   0x4   :  { %11 = vsyncpa [#allocation6], 0 }
   0x5   :  { %13 = vsyncpa [#allocation6 + $0x1], 0 }
   0x6   :  { %14 = vsyncpa [#allocation4], 0 }
   0x7   :  { %16 = vsyncpa [#allocation4 + $0x1], 0  ;;  %s928_s12 = smov 0   ;;  %s930_s13 = smov 0  }
   0x8   :  { %s932_s14 = smov 0   ;;  %s934_s15 = smov 0  }
   0x9   :  { %s936_s16 = smov 0   ;;  %s938_s17 = smov 0  }
   0xa LB: > { %1107 = sst [smem:[#allocation13_spill]] %s897_s16  ;;  %s959_s18 = sadd.s32 4294967295, %s901_s17   ;;  %s901_s17 = sphi %s938_s17, %s22_s17   ;;  %s897_s16 = sphi %s936_s16, %s1118_s16   ;;  %s893_s15 = sphi %s934_s15, %s1117_s15   ;;  %s889_s14 = sphi %s932_s14, %s1121_s14   ;;  %s885_s13 = sphi %s930_s13, %s1120_s13   ;;  %s881_s12 = sphi %s928_s12, %s1119_s12  }
   0xb   : > { %s594_s19 = sadd.s32 4294967294, %s901_s17   ;;  %p56_p0 = scmp.ne.s32.totalorder %s885_s13, %s881_s12 }
   0xc   : > { %p57_p1 = scmp.eq.s32.totalorder %s959_s18, 0  ;;  %p131_p2 = scmp.eq.s32.totalorder %s959_s18, 1 }
   0xd   : > { %p137_p3 = scmp.eq.s32.totalorder %s594_s19, 1  ;;  %p595_p5 = scmp.ge.s32.totalorder %s901_s17, 1 }
   0xe   : > { %p968_p4 = por %p57_p1, %p56_p0  ;;  %p144_p7 = scmp.lt.s32.totalorder %s901_s17, 3 }
   0xf   : > { %p973_p6 = por %p137_p3, %p56_p0  ;;  %s1110_s2 = sld [smem:[#allocation16_spill]] }
  0x10   : > { %p981_p8 = pnand %p595_p5, %p144_p7  ;;  %p597_p9 = scmp.ge.s32.totalorder %s901_s17, 2 }
  0x11   : > { %s903_s26 = smov [#allocation7]   ;;  %s34_s28 = sadd.s32 1, %s897_s16 }
  0x12   : > { %p637_p10 = pneg %p981_p8  ;;  %s158_s27 = sshll.u32 %s903_s26, 4  ;;  %s159_s27 = int_to_ptr.vmem [resolvable:$true] %s158_s27 }
  0x13   : > { %p36_p12 = scmp.ge.s32.totalorder %s34_s28, 2  ;;  %s43_s29 = sadd.s32 1, %s889_s14 }
  0x14   : > { %p638_p11 = pnand %p637_p10, %p57_p1  ;;  %p50_p13 = scmp.ne.s32.totalorder %s889_s14, %s885_s13 }
  0x15   : > { %s156_s24 = sshll.u32 %s1110_s2, 4  ;;  %p51_p0 = scmp.eq.s32.totalorder %s901_s17, 0  ;;  %s157_s24 = int_to_ptr.hbm [resolvable:$true] %s156_s24 }
  0x16   : > { %640 = dma.hbm_to_vmem [thread:$0]  (!%p638_p11), %s157_s24, 128, %s159_s27, [#allocation6]  }
  0x17   : > { %s1123_s28 = smov (%p36_p12, %s34_s28), 0  ;;  %p997_p3 = por %p51_p0, %p50_p13 }
  0x18   : > { %1112 = sst [smem:[#allocation14_spill]] %s1123_s28  ;;  %p1003_p5 = por %p131_p2, %p50_p13 }
  0x19   : > { %s38_s5 = ssub.s32 %s897_s16, %s1123_s28  ;;  %p653_p7 = scmp.lt.s32.totalorder %s901_s17, 2 }
  0x1a   : > { %p41_p10 = scmp.eq.s32.totalorder %s38_s5, 0  ;;  %s169_s6 = sand.u32 1, %s889_s14  }
  0x1b   : > { %s598_s7 = sshll.u32 %s169_s6, 3  ;;  %s624_s9 = sshll.u32 %s897_s16, 3 }
  0x1c   : > { %s1012_s8 = scalar_select %p41_p10, %s889_s14, %s43_s29  }
  0x1d   : > { %s180_s19 = scalar_lea.hbm %s1100_s0, %s624_s9  ;;  %s173_s22 = scalar_lea.vmem [#allocation2], %s598_s7 }
  0x1e   : > { %1115 = sst [smem:[#allocation15_spill]] %s1012_s8  ;;  %s184_s23 = sshll.u32 %s173_s22, 4  ;;  %s185_s23 = int_to_ptr.vmem [resolvable:$true] %s184_s23 }
  0x1f   : > { %s182_s24 = sshll.u32 %s180_s19, 4  ;;  %p642_p2 = pnand %p653_p7, %p997_p3  ;;  %s183_s24 = int_to_ptr.hbm [resolvable:$true] %s182_s24 }
  0x20   : > { %s202_s5 = scalar_lea.hbm %s1101_s1, %s624_s9  ;;  %s191_s2 = sand.u32 1, %s901_s17  }
  0x21   : > { %s170_s28 = scalar_lea.sflag [#allocation3], %s169_s6  ;;  %s204_s29 = sshll.u32 %s202_s5, 4  ;;  %s205_s29 = int_to_ptr.hbm [resolvable:$true] %s204_s29 }
  0x22   : > { %644 = dma.hbm_to_vmem [thread:$0]  (!%p642_p2), %s183_s24, 128, %s185_s23, %s170_s28  }
  0x23   : > { %s195_s16 = scalar_lea.vmem [#allocation5], %s598_s7  ;;  %s192_s10 = scalar_lea.sflag [#allocation6], %s191_s2 }
  0x24   : > { %s206_s8 = sshll.u32 %s195_s16, 4  ;;  %215 = sbr.rel (%p981_p8) target bundleno = 350 (0x15e), region = 32  ;;  %s207_s8 = int_to_ptr.vmem [resolvable:$true] %s206_s8 }
  0x25   : > { %647 = dma.hbm_to_vmem [thread:$0]  (!%p642_p2), %s205_s29, 128, %s207_s8, %s192_s10  }
  0x26   : > { %s1027_s30 = sand.u32 (!%p981_p8), 1, %s885_s13  }
  0x27   : > { %s1030_s9 = sshll.u32 (!%p981_p8), %s1027_s30, 3  ;;  %s218_s28 = scalar_lea.sflag (!%p981_p8), [#allocation3], %s1027_s30 }
  0x28   : > { %s221_s6 = scalar_lea.vmem (!%p981_p8), [#allocation2], %s1030_s9 }
  0x29   : > { %864 = dma.done.wait (%p968_p4), %s218_s28, 128  }
  0x2a   : > { %866 = vsyncadd (%p968_p4), %s218_s28, 4294967168  ;;  %s227_s2 = sand.u32 1, %s959_s18   ;;  %s231_s25 = scalar_lea.vmem [#allocation5], %s1030_s9 }
  0x2b   : > { %s228_s16 = scalar_lea.sflag [#allocation6], %s227_s2 }
  0x2c   : > { %868 = dma.done.wait (%p968_p4), %s228_s16, 128  }
  0x2d   : > { %870 = vsyncadd (%p968_p4), %s228_s16, 4294967168 }
  0x2e   : > { %872 = dma.done.wait (%p57_p1), [#allocation6], 128  }
  0x2f   : > { %874 = vsyncadd (%p57_p1), [#allocation6], 4294967168  ;;  %v1048_v0 = vld [vmem:[%s231_s25] sm:$0xff]  ;;  %v270_v1 = vld [vmem:[#allocation7] sm:$0xff]  ;;  %s904_s7 = smov 124   ;;  %vm281_vm0 = vcmask 1043456  }
  0x30   : > { %275 = vst [vmem:[#allocation1] ss:$2 sm:$0xff] %v1048_v0  ;;  %272 = vrot.lane.b32.xlu0 %v270_v1, %s904_s7  ;;  %v268_v2 = vld [vmem:[%s221_s6] sm:$0xff]  ;;  %vm278_vm1 = vcmask 31744   ;;  %v905_v7 = vmov 8   ;;  %v906_v8 = vmov 9  }
  0x31   : > { %709 = vset.pattern.permute.xlu0 %v905_v7  ;;  %710 = vset.pattern.permute.xlu1 %v906_v8  ;;  %v907_v9 = vmov 10   ;;  %s626_s18 = sshll.u32 %s893_s15, 3  ;;  %s264_s19 = scalar_lea.vmem [#allocation8], %s1030_s9 }
  0x32   : > { %385 = vperm.xlu1 %710, %v270_v1   ;;  %s469_s11 = scalar_lea.hbm %s1103_s3, %s626_s18  ;;  %s471_s15 = sshll.u32 %s264_s19, 4  ;;  %s472_s15 = int_to_ptr.vmem [resolvable:$true] %s471_s15 }
  0x33   : > { %s473_s22 = sshll.u32 %s469_s11, 4  ;;  %s456_s23 = scalar_lea.sflag [#allocation4], %s1027_s30  ;;  %s474_s22 = int_to_ptr.hbm [resolvable:$true] %s473_s22 }
  0x34   : > { %s825_s24 = sshra.s32 %s474_s22, 4  ;;  %s831_s29 = scalar_lea.hbm %s1103_s3, 16  ;;  %s826_s24 = int_to_ptr.hbm [resolvable:$true] %s825_s24 }
  0x35   : > { %s827_s26 = scalar_lea.hbm %s826_s24, 8  ;;  %p832_p11 = scmp.lt.s32.totalorder %s826_s24, %s1103_s3 }
  0x36   : > { %p828_p1 = scmp.ne.s32.totalorder %s826_s24, %s827_s26  ;;  %p833_p12 = scmp.lt.s32.totalorder %s831_s29, %s827_s26 }
  0x37   : > { %v276_v3 = vld.sshfl [vmem:[#allocation1] sm:$0xff pattern:$0x75316420]  ;;  %v277_v4 = vld.sshfl [vmem:[#allocation1 + $0x8] sm:$0xff pattern:$0x75316420] }
  0x38   : > { %327 = vst [vmem:[#allocation1] ss:$2 sm:$0xff] %v268_v2  ;;  %609 = vmatpush.msk.msra.mxu0 %vm281_vm0, %v276_v3  ;;  %611 = vmatpush.msk.msra.mxu1 %vm281_vm0, %v277_v4  ;;  %p829_p4 = pnand %p828_p1, %p1003_p5  ;;  %p834_p13 = por %p833_p12, %p832_p11 }
  0x39   : > { %377 = vperm.xlu0 %709, %v270_v1  }
  0x3a   : > { %711 = vset.pattern.permute.xlu1 %v907_v9  ;;  %p830_p8 = pneg %p829_p4 }
  0x3b   : > { %403 = vperm.xlu1 %711, %v270_v1  }
  0x3c   : > { %p835_p0 = pnand %p834_p13, %p830_p8 }
  0x3f   : > { %v328_v5 = vld.sshfl [vmem:[#allocation1] sm:$0xff pattern:$0x75316420]  ;;  %v329_v6 = vld.sshfl [vmem:[#allocation1 + $0x8] sm:$0xff pattern:$0x75316420] }
  0x40   : > { %613 = vmatpush.msk.msra.mxu2 %vm281_vm0, %v328_v5  ;;  %615 = vmatpush.msk.msra.mxu3 %vm281_vm0, %v329_v6 }
  0x41   : > { %614 = vmatmul.msk.f32.vlgmr.msra.gmra.mxu2 %vm278_vm1, %v270_v1  ;;  %616 = vmatmul.msk.f32.vlgmr.msra.gmra.mxu3 %vm278_vm1, %v270_v1 }
  0x42   : > { %712 = vset.pattern.permute.xlu0 %v907_v9 }
  0xa2   : > { %v273_v10 = vpop.permute.xlu0 %272 }
  0xa3   : > { %610 = vmatmul.msk.f32.vlgmr.msra.gmra.mxu0 %vm278_vm1, %v273_v10  ;;  %612 = vmatmul.msk.f32.vlgmr.msra.gmra.mxu1 %vm278_vm1, %v273_v10 }
  0xa4   : > { %v386_v20 = vpop.permute.xlu1 %385 }
  0xab   : > { %v378_v13 = vpop.permute.xlu0 %377 }
  0xad   : > { %v404_v35 = vpop.permute.xlu1 %403 }
  0xc4   : > { %v353_v11 = vpop.f32.mrf.mxu2  ;;  %v373_v12 = vpop.f32.mrf.mxu3 }
 0x120   : > { %v303_v14 = vpop.f32.mrf.mxu0  ;;  %v323_v15 = vpop.f32.mrf.mxu1 }
 0x121   : > { %v354_v16 = vadd.f32 %v353_v11, %v303_v14  ;;  %v374_v17 = vadd.f32 %v373_v12, %v323_v15 }
 0x123   : > { %v380_v18 = vadd.f32 %v378_v13, %v354_v16  ;;  %v381_v19 = vadd.f32 %v378_v13, %v374_v17 }
 0x125   : > { %v382_v21 = vmax.f32 %v380_v18, 0.0  ;;  %v383_v22 = vmax.f32 %v381_v19, 0.0 }
 0x127   : > { %v388_v23 = vmul.f32 %v386_v20, %v382_v21  ;;  %v389_v24 = vmul.f32 %v386_v20, %v383_v22 }
 0x129   : > { %v390_v25 = vrot.slane %v388_v23, 4  ;;  %v396_v26 = vrot.slane %v389_v24, 4 }
 0x12b   : > { %v391_v27 = vadd.f32 %v390_v25, %v388_v23  ;;  %v397_v28 = vadd.f32 %v396_v26, %v389_v24 }
 0x12d   : > { %v392_v29 = vrot.slane %v391_v27, 2  ;;  %v398_v30 = vrot.slane %v397_v28, 2 }
 0x12f   : > { %v393_v31 = vadd.f32 %v392_v29, %v391_v27  ;;  %v399_v32 = vadd.f32 %v398_v30, %v397_v28 }
 0x131   : > { %v394_v33 = vrot.slane %v393_v31, 1  ;;  %v400_v34 = vrot.slane %v399_v32, 1 }
 0x133   : > { %v395_v36 = vadd.f32 %v394_v33, %v393_v31  ;;  %v401_v37 = vadd.f32 %v400_v34, %v399_v32 }
 0x135   : > { %v406_v38 = vadd.f32 %v404_v35, %v395_v36  ;;  %v407_v39 = vadd.f32 %v404_v35, %v401_v37 }
 0x137   : > { %v617_v40 = vmul.f32 -1.442695, %v406_v38  ;;  %v618_v41 = vmul.f32 -1.442695, %v407_v39 }
 0x139   : > { %713 = vpow2.f32 %v617_v40 }
 0x13a   : > { %715 = vpow2.f32 %v618_v41 }
 0x13f   : > { %v714_v42 = vpop.eup %713 }
 0x140   : > { %v716_v43 = vpop.eup %715  ;;  %v414_v44 = vadd.f32 1.0, %v714_v42 }
 0x141   : > { %v415_v45 = vadd.f32 1.0, %v716_v43 }
 0x142   : > { %717 = vrcp.f32 %v414_v44  ;;  %v427_v53 = vand.u32 2147483648, %v414_v44  ;;  %v425_v55 = vand.u32 2147483647, %v414_v44  ;;  %vm421_vm4 = vweird.f32 %v414_v44 }
 0x143   : > { %719 = vrcp.f32 %v415_v45  ;;  %v442_v54 = vand.u32 2147483648, %v415_v45  ;;  %v440_v57 = vand.u32 2147483647, %v415_v45  ;;  %vm436_vm6 = vweird.f32 %v415_v45 }
 0x144   : > { %v428_v60 = vor.u32 1.1754944e-38, %v427_v53  ;;  %vm426_vm8 = vcmp.eq.f32.partialorder %v425_v55, 8.507059e+37 }
 0x145   : > { %v443_v61 = vor.u32 1.1754944e-38, %v442_v54  ;;  %vm441_vm9 = vcmp.eq.f32.partialorder %v440_v57, 8.507059e+37 }
 0x148   : > { %v718_v46 = vpop.eup %717 }
 0x149   : > { %v720_v47 = vpop.eup %719  ;;  %v417_v48 = vmul.f32 %v718_v46, %v414_v44  ;;  %vm422_vm2 = vweird.f32 %v718_v46 }
 0x14a   : > { %v432_v49 = vmul.f32 %v720_v47, %v415_v45  ;;  %vm437_vm3 = vweird.f32 %v720_v47  ;;  %vm423_vm5 = vmor %vm421_vm4, %vm422_vm2 }
 0x14b   : > { %v418_v50 = vsub.f32 1.0, %v417_v48  ;;  %vm438_vm7 = vmor %vm436_vm6, %vm437_vm3 }
 0x14c   : > { %v433_v51 = vsub.f32 1.0, %v432_v49 }
 0x14d   : > { %v419_v52 = vmul.f32 %v718_v46, %v418_v50 }
 0x14e   : > { %v434_v56 = vmul.f32 %v720_v47, %v433_v51 }
 0x14f   : > { %v420_v58 = vadd.f32 %v718_v46, %v419_v52 }
 0x150   : > { %v435_v59 = vadd.f32 %v720_v47, %v434_v56 }
 0x151   : > { %v424_v62 = vsel %vm423_vm5, %v718_v46, %v420_v58 }
 0x152   : > { %v439_v63 = vsel %vm438_vm7, %v720_v47, %v435_v59  ;;  %v429_v1 = vsel %vm426_vm8, %v428_v60, %v424_v62 }
 0x153   : > { %v444_v2 = vsel %vm441_vm9, %v443_v61, %v439_v63  ;;  %v446_v4 = vperm.slane %v429_v1, 0 }
 0x154   : > { %v447_v3 = vperm.slane %v444_v2, 0 }
 0x156   : > { %v450_v5 = vrot.slane %v447_v3, 4 }
 0x158   : > { %v451_v6 = vsel %vm281_vm0, %v446_v4, %v450_v5 }
 0x159   : > { %v453_v7 = vmul.f32 %v451_v6, %v1048_v0 }
 0x15b   : > { %454 = vst [vmem:[%s264_s19] sm:$0xff] %v453_v7 }
 0x15c   : > { %838 = shalt.err (!%p835_p0)
}
 0x15d   : > { %635 = dma.vmem_to_hbm [thread:$0]  (%p1003_p5), %s472_s15, 128, %s474_s22, %s456_s23  }
 0x15e PF: > { %s485_s30 = sand.u32 1, %s881_s12   ;;  %p649_p3 = pnand %p597_p9, %p973_p6 }
 0x15f   : > { %s486_s28 = scalar_lea.sflag [#allocation4], %s485_s30 }
 0x160   : > { %p650_p7 = pneg %p649_p3 }
 0x162   : > { %876 = dma.done.wait (%p650_p7), %s486_s28, 128  }
 0x163   : > { %878 = vsyncadd (%p650_p7), %s486_s28, 4294967168  ;;  %s22_s17 = sadd.s32 1, %s901_s17   ;;  %s1116_s6 = sld [smem:[#allocation15_spill]] }
 0x164   : > { %p19_p10 = scmp.ge.s32.totalorder %s22_s17, 4   ;;  %s1117_s15 = sld [smem:[#allocation13_spill]] }
 0x165   : > { %s1118_s16 = sld [smem:[#allocation14_spill]]  ;;  %s1119_s12 = smov %s885_s13 }
 0x166   : > { %s1120_s13 = smov %s889_s14  ;;  %21 = sbr.rel (!%p19_p10) target bundleno = 10 (0xa), region = 94 }
 0x169   : > { %s1121_s14 = smov %s1116_s6 }
 0x16b   :  { %492 = vsyncpa [#allocation3], 1 }
 0x16c   :  { %494 = vsyncpa [#allocation3 + $0x1], 1 }
 0x16d   :  { %495 = vsyncpa [#allocation6], 1 }
 0x16e   :  { %497 = vsyncpa [#allocation6 + $0x1], 1 }
 0x16f   :  { %498 = vsyncpa [#allocation4], 1 }
 0x170   :  { %500 = vsyncpa [#allocation4 + $0x1], 1 }

</bundles_post_ra>
